<compile_context>
chip_gen: v7x
topology: tpu7x:2x2x1
jax: 0.10.0
libtpu: 0.0.40
codegen_flags: <defaults>
</compile_context>

<pallas_src>
import functools

import jax
import jax.numpy as jnp
from jax import lax
from jax.experimental import pallas as pl
from jax.experimental.pallas import tpu as pltpu
import numpy as np


# ----------------------------- helpers ------------------------------------- #

def _round_up(n, m):
    return (n + m - 1) // m * m


def _hw_budget():
    """(max_block_bytes, vmem_limit_bytes), chip-aware when query is available."""
    try:
        vmem = pltpu.get_tpu_info().vmem_capacity_bytes
    except Exception:
        vmem = 64 * 1024 * 1024  # assume the tightest budget (v7x)
    if vmem >= 100 * 1024 * 1024:          # v5e / v6e: 128 MiB physical VMEM
        return 8 * 1024 * 1024, 96 * 1024 * 1024
    return 4 * 1024 * 1024, 48 * 1024 * 1024   # v7x: 64 MiB physical VMEM


def _choose_row_tile(rows, time_len, itemsize=4, max_block_bytes=4 * 1024 * 1024,
                     target_steps=8):
    """Row tile: multiple of 8 sublanes, capped by block-byte budget and so that the
    grid has >= target_steps steps whenever the row count permits."""
    rows8 = _round_up(rows, 8)
    cap_bytes = max(8, (max_block_bytes // max(1, time_len * itemsize)) // 8 * 8)
    cap_par = max(8, _round_up(pl.cdiv(rows, target_steps), 8))
    return min(rows8, cap_bytes, cap_par)


def _compiler_params(vmem_limit_bytes):
    return pltpu.CompilerParams(
        dimension_semantics=("parallel",),
        vmem_limit_bytes=vmem_limit_bytes,
    )


# ----------------------------- kernels ------------------------------------- #

def _revin_fwd_kernel(x_ref, gb_ref, out_ref, mv_ref, *, eps):
    # x block: (TR, T); gb block: (TR, 2) = [gamma, beta]; mv block: (TR, 2) = [mean, var]
    x = x_ref[...].astype(jnp.float32)
    gb = gb_ref[...].astype(jnp.float32)
    gamma = gb[:, 0:1]
    beta = gb[:, 1:2]

    mean = jnp.mean(x, axis=-1, keepdims=True)                    # (TR, 1)
    centered = x - mean
    var = jnp.mean(centered * centered, axis=-1, keepdims=True)   # unbiased=False
    rstd = lax.rsqrt(jnp.maximum(var, eps))                       # clamp(min=eps).rsqrt()

    scale = rstd * gamma                                          # (TR, 1)
    bias = beta - mean * scale                                    # (TR, 1)
    out_ref[...] = (x * scale + bias).astype(out_ref.dtype)       # single FMA epilogue
    mv_ref[...] = jnp.concatenate([mean, var], axis=-1).astype(mv_ref.dtype)


def _revin_rev_kernel(y_ref, sb_ref, out_ref):
    # y block: (TR, T); sb block: (TR, 2) = [scale, bias] precomputed per row.
    y = y_ref[...].astype(jnp.float32)
    sb = sb_ref[...].astype(jnp.float32)
    scale = sb[:, 0:1]
    bias = sb[:, 1:2]
    out_ref[...] = (y * scale + bias).astype(out_ref.dtype)


# ----------------------------- wrappers ------------------------------------- #

def revin_forward(x, gamma, beta, eps=1e-5):
    """Returns (rescaled, reverse_fn) matching the PyTorch RevIN.forward."""
    B, V, T = x.shape
    assert gamma.shape == (V, 1) and beta.shape == (V, 1)
    R = B * V
    max_block_bytes, vmem_limit = _hw_budget()
    TR = _choose_row_tile(R, T, max_block_bytes=max_block_bytes)
    grid = (pl.cdiv(R, TR),)

    x2 = x.reshape(R, T)
    gb = jnp.concatenate(
        [jnp.broadcast_to(gamma.reshape(1, V, 1), (B, V, 1)),
         jnp.broadcast_to(beta.reshape(1, V, 1), (B, V, 1))],
        axis=-1).reshape(R, 2).astype(jnp.float32)

    kernel = functools.partial(_revin_fwd_kernel, eps=eps)
    out2, mv = pl.pallas_call(
        kernel,
        out_shape=(
            jax.ShapeDtypeStruct((R, T), x.dtype),
            jax.ShapeDtypeStruct((R, 2), jnp.float32),
        ),
        grid=grid,
        in_specs=[
            pl.BlockSpec((TR, T), lambda r: (r, 0)),
            pl.BlockSpec((TR, 2), lambda r: (r, 0)),
        ],
        out_specs=(
            pl.BlockSpec((TR, T), lambda r: (r, 0)),
            pl.BlockSpec((TR, 2), lambda r: (r, 0)),
        ),
        compiler_params=_compiler_params(vmem_limit),
    )(x2, gb)

    rescaled = out2.reshape(B, V, T)
    mean = mv[:, 0:1].reshape(B, V, 1)
    var = mv[:, 1:2].reshape(B, V, 1)

    def reverse_fn(scaled_output):
        return revin_reverse(scaled_output, gamma, beta, mean, var, eps)

    return rescaled, reverse_fn


def revin_reverse(y, gamma, beta, mean, var, eps=1e-5):
    B, V, T = y.shape
    R = B * V
    max_block_bytes, vmem_limit = _hw_budget()
    TR = _choose_row_tile(R, T, max_block_bytes=max_block_bytes)
    grid = (pl.cdiv(R, TR),)

    y2 = y.reshape(R, T)
    # Per-row scale/bias precomputed on B*V elements only (tiny JAX ops).
    clamped_gamma = jnp.sign(gamma) * jnp.maximum(jnp.abs(gamma), eps)     # (V, 1)
    scale = jnp.sqrt(var.astype(jnp.float32)) / clamped_gamma[None]        # (B, V, 1)
    bias = mean.astype(jnp.float32) - beta[None].astype(jnp.float32) * scale
    sb = jnp.concatenate([scale, bias], axis=-1).reshape(R, 2).astype(jnp.float32)

    out2 = pl.pallas_call(
        _revin_rev_kernel,
        out_shape=jax.ShapeDtypeStruct((R, T), y.dtype),
        grid=grid,
        in_specs=[
            pl.BlockSpec((TR, T), lambda r: (r, 0)),
            pl.BlockSpec((TR, 2), lambda r: (r, 0)),
        ],
        out_specs=pl.BlockSpec((TR, T), lambda r: (r, 0)),
        compiler_params=_compiler_params(vmem_limit),
    )(y2, sb)

    return out2.reshape(B, V, T)


# ----------------------------- reference ------------------------------------ #

def revin_forward_ref(x, gamma, beta, eps=1e-5):
    mean = jnp.mean(x, axis=-1, keepdims=True)
    var = jnp.mean((x - mean) ** 2, axis=-1, keepdims=True)
    var_rsqrt = lax.rsqrt(jnp.maximum(var, eps))
    norm = (x - mean) * var_rsqrt
    rescaled = norm * gamma[None] + beta[None]
    return rescaled, mean, var


def revin_reverse_ref(y, gamma, beta, mean, var, eps=1e-5):
    cg = jnp.sign(gamma) * jnp.maximum(jnp.abs(gamma), eps)
    return (y - beta[None]) / cg[None] * jnp.sqrt(var) + mean


# ------------------------------- main ---------------------------------------- #

if __name__ == "__main__":
    eps = 1e-5
    base_key = jax.random.PRNGKey(0)

    def run_case(B, V, T):
        kx = jax.random.fold_in(base_key, B * 100000 + V * 1000 + T)
        x = jax.random.normal(kx, (B, V, T), dtype=jnp.float32) * 3.0 + 1.5
        gamma = jnp.linspace(0.5, 1.5, V, dtype=jnp.float32).reshape(V, 1)
        beta = jnp.linspace(-0.25, 0.4, V, dtype=jnp.float32).reshape(V, 1)

        rescaled, reverse_fn = revin_forward(x, gamma, beta, eps)
        recovered = reverse_fn(rescaled)
        jax.block_until_ready(rescaled)
        jax.block_until_ready(recovered)

        ref_rescaled, ref_mean, ref_var = revin_forward_ref(x, gamma, beta, eps)
        ref_recovered = revin_reverse_ref(ref_rescaled, gamma, beta,
                                          ref_mean, ref_var, eps)

        np.testing.assert_allclose(np.asarray(rescaled), np.asarray(ref_rescaled),
                                   rtol=1e-5, atol=1e-5)
        np.testing.assert_allclose(np.asarray(recovered), np.asarray(ref_recovered),
                                   rtol=1e-5, atol=1e-5)
        np.testing.assert_allclose(np.asarray(recovered), np.asarray(x),
                                   rtol=1e-4, atol=1e-4)

    run_case(2, 4, 16)     # primary shape: batch=2, num_variates=4, time=16 (one tile)
    run_case(3, 5, 16)     # non-multiple-of-8 rows -> masked partial last block
    run_case(2, 64, 256)   # multi-step parallel grid (R=128 rows, TR=16 -> 8 steps)

    print("KERNEL_OK")
</pallas_src>

<mosaic_0001>
module attributes {stable_mosaic.version = 11 : i64} {
  func.func @_revin_fwd_kernel(%arg0: i32, %arg1: memref<8x16xf32, #tpu.memory_space<vmem>>, %arg2: memref<8x2xf32, #tpu.memory_space<vmem>>, %arg3: memref<8x16xf32, #tpu.memory_space<vmem>>, %arg4: memref<8x2xf32, #tpu.memory_space<vmem>>) attributes {dimension_semantics = [#tpu.dimension_semantics<parallel>], iteration_bounds = array<i64: 1>, scalar_prefetch = 0 : i64, scratch_operands = 0 : i64, tpu.core_type = #tpu.core_type<tc>, window_params = [{transform_indices = @transform_0, window_bounds = array<i64: 8, 16>}, {transform_indices = @transform_1, window_bounds = array<i64: 8, 2>}, {transform_indices = @transform_2, window_bounds = array<i64: 8, 16>}, {transform_indices = @transform_3, window_bounds = array<i64: 8, 2>}]} {
    %c0 = arith.constant 0 : index
    %c0_0 = arith.constant 0 : index
    %0 = vector.load %arg1[%c0, %c0_0] : memref<8x16xf32, #tpu.memory_space<vmem>>, vector<8x16xf32>
    %c0_1 = arith.constant 0 : index
    %c0_2 = arith.constant 0 : index
    %1 = vector.load %arg2[%c0_1, %c0_2] : memref<8x2xf32, #tpu.memory_space<vmem>>, vector<8x2xf32>
    %2 = vector.extract_strided_slice %1 {offsets = [0, 0], sizes = [8, 1], strides = [1, 1]} : vector<8x2xf32> to vector<8x1xf32>
    %3 = vector.extract_strided_slice %1 {offsets = [0, 1], sizes = [8, 1], strides = [1, 1]} : vector<8x2xf32> to vector<8x1xf32>
    %cst = arith.constant dense<0.000000e+00> : vector<8xf32>
    %4 = vector.multi_reduction <add>, %0, %cst [1] : vector<8x16xf32> to vector<8xf32>
    %5 = vector.shape_cast %4 : vector<8xf32> to vector<8x1xf32>
    %cst_3 = arith.constant 1.600000e+01 : f32
    %6 = vector.broadcast %cst_3 : f32 to vector<8x1xf32>
    %7 = arith.divf %5, %6 : vector<8x1xf32>
    %8 = vector.broadcast %7 : vector<8x1xf32> to vector<8x16xf32>
    %9 = arith.subf %0, %8 : vector<8x16xf32>
    %10 = arith.mulf %9, %9 : vector<8x16xf32>
    %cst_4 = arith.constant dense<0.000000e+00> : vector<8xf32>
    %11 = vector.multi_reduction <add>, %10, %cst_4 [1] : vector<8x16xf32> to vector<8xf32>
    %12 = vector.shape_cast %11 : vector<8xf32> to vector<8x1xf32>
    %cst_5 = arith.constant 1.600000e+01 : f32
    %13 = vector.broadcast %cst_5 : f32 to vector<8x1xf32>
    %14 = arith.divf %12, %13 : vector<8x1xf32>
    %cst_6 = arith.constant 9.99999974E-6 : f32
    %15 = vector.broadcast %cst_6 : f32 to vector<8x1xf32>
    %16 = arith.maximumf %14, %15 : vector<8x1xf32>
    %17 = math.rsqrt %16 : vector<8x1xf32>
    %18 = arith.mulf %17, %2 : vector<8x1xf32>
    %19 = arith.mulf %7, %18 : vector<8x1xf32>
    %20 = arith.subf %3, %19 : vector<8x1xf32>
    %21 = vector.broadcast %18 : vector<8x1xf32> to vector<8x16xf32>
    %22 = arith.mulf %0, %21 : vector<8x16xf32>
    %23 = vector.broadcast %20 : vector<8x1xf32> to vector<8x16xf32>
    %24 = arith.addf %22, %23 : vector<8x16xf32>
    %c0_7 = arith.constant 0 : index
    %c0_8 = arith.constant 0 : index
    %25 = vector.load %arg3[%c0_7, %c0_8] : memref<8x16xf32, #tpu.memory_space<vmem>>, vector<8x16xf32>
    tpu.vector_store %arg3[%c0_7, %c0_8], %24 {strides = array<i32>} : memref<8x16xf32, #tpu.memory_space<vmem>>, vector<8x16xf32>,
    %26 = tpu.concatenate %7, %14 in 1 : vector<8x1xf32>, vector<8x1xf32> -> vector<8x2xf32>
    %c0_9 = arith.constant 0 : index
    %c0_10 = arith.constant 0 : index
    %27 = vector.load %arg4[%c0_9, %c0_10] : memref<8x2xf32, #tpu.memory_space<vmem>>, vector<8x2xf32>
    tpu.vector_store %arg4[%c0_9, %c0_10], %26 {strides = array<i32>} : memref<8x2xf32, #tpu.memory_space<vmem>>, vector<8x2xf32>,
    return
  }
  func.func @transform_0(%arg0: i32) -> (i32, i32) {
    %c0_i32 = arith.constant 0 : i32
    %c0_i32_0 = arith.constant 0 : i32
    return %arg0, %c0_i32 : i32, i32
  }
  func.func @transform_1(%arg0: i32) -> (i32, i32) {
    %c0_i32 = arith.constant 0 : i32
    %c0_i32_0 = arith.constant 0 : i32
    return %arg0, %c0_i32 : i32, i32
  }
  func.func @transform_2(%arg0: i32) -> (i32, i32) {
    %c0_i32 = arith.constant 0 : i32
    %c0_i32_0 = arith.constant 0 : i32
    return %arg0, %c0_i32 : i32, i32
  }
  func.func @transform_3(%arg0: i32) -> (i32, i32) {
    %c0_i32 = arith.constant 0 : i32
    %c0_i32_0 = arith.constant 0 : i32
    return %arg0, %c0_i32 : i32, i32
  }
}

</mosaic_0001>

<bundles_post_ra>
// kernel: tpu_custom_call.1
= control target key start
LH: loop header
LB: loop body
LE: loop exit
PB: predicated region body
PF: predicated region fallthrough
CT: control target
= control target key end

     0   :  { %vm16_vm0 = vcmask 130048   ;;  %s152_s0 = inlined_call_operand.vmem [shape: f32[8,16], index: 0, kind: input, shape index: {}]   ;;  %s153_s1 = inlined_call_operand.vmem [shape: f32[8,2], index: 1, kind: input, shape index: {}]   ;;  %s154_s2 = inlined_call_operand.hbm [shape: f32[8,16], index: 2, kind: output, shape index: {0}]   ;;  %s155_s3 = inlined_call_operand.vmem [shape: f32[8,2], index: 3, kind: output, shape index: {1}]  }
   0x1   :  { %v14_v0 = vld [vmem:[%s152_s0] sm:$0xff] }
   0x2   :  { %9 = vsyncpa [#allocation3], 0  ;;  %v17_v1 = vsel %vm16_vm0, %v14_v0, 0.0  ;;  %v104_v7 = vmov 0   ;;  %vm50_vm1 = vcmask 7168   ;;  %vm52_vm2 = vcmask 15360  }
   0x3   :  { %18 = vadd.xlane.f32.xlu0 %v17_v1  ;;  %76 = vset.pattern.permute.xlu1 %v104_v7  ;;  %v105_v12 = vmov 1   ;;  %v15_v13 = vld [vmem:[%s153_s1] sm:$0xff]  ;;  %s106_s17 = smov 1   ;;  %s107_s18 = smov [#allocation2]  }
   0x4   :  { %77 = vset.pattern.permute.xlu0 %v105_v12  ;;  %s60_s19 = sshll.u32 %s107_s18, 4  ;;  %s61_s19 = int_to_ptr.vmem [resolvable:$true] %s60_s19 }
   0x5   :  { %p85_p1 = scmp.lt.s32.totalorder %s61_s19, %s61_s19 }
  0x90   :  { %v19_v2 = vpop.xlane.xlu0 %18 }
  0x91   :  { %v21_v3 = vmul.f32 0.0625, %v19_v2 }
  0x93   :  { %v22_v4 = vsub.f32 %v14_v0, %v21_v3 }
  0x95   :  { %v23_v5 = vmul.f32 %v22_v4, %v22_v4 }
  0x97   :  { %v24_v6 = vsel %vm16_vm0, %v23_v5, 0.0 }
  0x98   :  { %25 = vadd.xlane.f32.xlu0 %v24_v6 }
 0x125   :  { %v26_v8 = vpop.xlane.xlu0 %25 }
 0x126   :  { %v27_v9 = vmul.f32 0.0625, %v26_v8 }
 0x128   :  { %v28_v10 = vmax.f32 %v27_v9, 1e-05  ;;  %v51_v11 = vsel %vm50_vm1, %v21_v3, %v27_v9 }
 0x129   :  { %53 = vst.msk [vmem:[%s155_s3] sm:$0xff] %vm52_vm2, %v51_v11  ;;  %s80_s3 = scalar_lea.vmem %s61_s19, 128 }
 0x12a   :  { %78 = vrsqrt.f32 %v28_v10  ;;  %p81_p0 = scmp.ne.s32.totalorder %s61_s19, %s80_s3  ;;  %p86_p2 = scmp.lt.s32.totalorder %s80_s3, %s80_s3 }
 0x12c   :  { %p87_p3 = por %p86_p2, %p85_p1 }
 0x12e   :  { %p88_p4 = pnand %p87_p3, %p81_p0 }
 0x134   :  { %v79_v14 = vpop.eup %78 }
 0x135   :  { %v30_v15 = vmul.f32 %v79_v14, %v15_v13 }
 0x137   :  { %v31_v16 = vmul.f32 %v30_v15, %v21_v3 }
 0x139   :  { %33 = vrot.lane.b32.xlu1 %v31_v16, %s106_s17 }
 0x13d   :  { %39 = vperm.xlu1 %76, %v30_v15  }
 0x1ab   :  { %v34_v17 = vpop.permute.xlu1 %33 }
 0x1ac   :  { %v36_v18 = vsub.f32 %v15_v13, %v34_v17 }
 0x1ae   :  { %45 = vperm.xlu0 %77, %v36_v18  }
 0x1bc   :  { %v40_v19 = vpop.permute.xlu1 %39 }
 0x1bd   :  { %v42_v20 = vmul.f32 %v40_v19, %v14_v0 }
 0x22d   :  { %v46_v21 = vpop.permute.xlu0 %45 }
 0x22e   :  { %v48_v22 = vadd.f32 %v46_v21, %v42_v20 }
 0x230   :  { %49 = vst.msk [vmem:[#allocation2] sm:$0xff] %vm16_vm0, %v48_v22 }
 0x231   :  { %91 = shalt.err (!%p88_p4)
}
 0x232   :  { %s92_s21 = scalar_lea.hbm %s154_s2, 128 }
 0x233   :  { %p93_p5 = scmp.ne.s32.totalorder %s154_s2, %s92_s21  ;;  %p96_p6 = scmp.lt.u32.totalorder %s92_s21, %s154_s2 }
 0x235   :  { %p98_p7 = pnand %p96_p6, %p93_p5 }
 0x237   :  { %101 = shalt.err (!%p98_p7)
}
 0x238   :  { %63 = dma.vmem_to_hbm [thread:$0]  %s61_s19, 128, %s154_s2, [#allocation3]  }
 0x239   :  { %102 = dma.done.wait [#allocation3], 128  }
 0x23a   :  { %103 = vsyncadd [#allocation3], 4294967168 }
 0x23b   :  { %71 = vsyncpa [#allocation3], 1 }

</bundles_post_ra>
